<compile_context>
chip_gen: v6e
topology: v6e:2x2x1
jax: 0.10.0
libtpu: 0.0.40
codegen_flags: <defaults>
</compile_context>

<pallas_src>
import jax
import jax.numpy as jnp
from jax import lax
from jax.experimental import pallas as pl
from jax.experimental.pallas import tpu as pltpu


DEGREE = 2
KNOTS = (1.0 / 3.0, 2.0 / 3.0)


def _round_up(n, m):
    return ((n + m - 1) // m) * m


def _make_kernel(num_layers, degree, knots, tile_b, chunk):
    num_basis = degree + 1 + len(knots)
    n_chunks = tile_b // chunk

    def kernel(x_ref, t_ref, *refs):
        # refs = (Ws_0, ..., Ws_{L-1}, out_ref); Ws_l is the stacked,
        # bias/ones-augmented weight (Op_l, K*Ip_l), VMEM-resident.
        out_ref = refs[-1]
        w_refs = refs[:-1]
        ws = [w_refs[l][...] for l in range(num_layers)]   # tiny, load once per tile

        def chunk_body(c, carry):
            off = pl.multiple_of(c * chunk, chunk)
            cols = pl.ds(off, chunk)

            t = t_ref[:, cols]                             # (1, C)
            # Truncated power basis; basis[0] == 1 is implicit (never materialized).
            basis = [None, t]
            for _ in range(2, degree + 1):
                basis.append(basis[-1] * t)
            for kn in knots:
                r = jnp.maximum(t - kn, 0.0)
                basis.append(r if degree == 1 else r ** degree)

            # Hoisted per-input-width broadcasts of the basis rows (JAX does not
            # CSE broadcast_in_dim across the unrolled layer loop).
            bcast = {}

            def basis_bcast(rows):
                if rows not in bcast:
                    bcast[rows] = [jnp.broadcast_to(basis[k], (rows, chunk))
                                   for k in range(1, num_basis)]
                return bcast[rows]

            h = x_ref[:, cols]                             # (Ip0, C); row in_dim == 1.0
            for l in range(num_layers):
                w = ws[l]
                bs = basis_bcast(h.shape[0])
                # One stacked operand -> one MXU contraction per layer; bias and
                # basis rows are carried by the constant-ones row inside h.
                hs = jnp.concatenate([h] + [bk * h for bk in bs], axis=0)
                z = jnp.dot(w, hs.astype(w.dtype),
                            preferred_element_type=jnp.float32)
                # ReLU on all but the last layer (ones row: ReLU(1)=1; pad rows stay 0).
                h = jnp.maximum(z, 0.0) if l < num_layers - 1 else z

            out_ref[:, cols] = h.astype(out_ref.dtype)     # lane-dense (out_dim, C)
            return carry

        lax.fori_loop(0, n_chunks, chunk_body, None, unroll=True)

    return kernel


def _stack_params(params, matmul_dtype):
    """Fold each layer's W (I,O,K) and b (O,K) into one stacked matrix (Op, K*Ip)
    acting on the ones-augmented, 8-row-padded input. Bias sits on the ones-row
    column of each basis block; hidden layers get one extra output row that
    re-emits the constant 1 for the next layer."""
    num_layers = len(params)
    stacked = []
    for l, (W, b) in enumerate(params):
        I, O, K = W.shape
        Ip = _round_up(I + 1, 8)
        last = l == num_layers - 1
        Op = O if last else _round_up(O + 1, 8)
        blk = jnp.zeros((Op, K, Ip), jnp.float32)
        blk = blk.at[:O, :, :I].set(jnp.transpose(W, (1, 2, 0)).astype(jnp.float32))
        blk = blk.at[:O, :, I].set(b.astype(jnp.float32))   # bias rides the ones row
        if not last:
            blk = blk.at[O, 0, I].set(1.0)                  # propagate the ones row
        stacked.append(blk.reshape(Op, K * Ip).astype(matmul_dtype))
    return stacked


def _choose_tiles(B, tile_b_max):
    b128 = _round_up(max(B, 1), 128)
    if b128 <= 128:
        tile_b = 128
    else:
        nb_t = max(2, pl.cdiv(b128, tile_b_max))
        if nb_t % 2:
            nb_t += 1            # even tile count -> both v7x TensorCores loaded evenly
        tile_b = _round_up(pl.cdiv(b128, nb_t), 128)
    nb = pl.cdiv(B, tile_b)
    chunk = next(c for c in (512, 384, 256, 128) if tile_b % c == 0)
    return tile_b, nb, chunk


def dynamic_pred_net_forward(x, t, params, *, degree=DEGREE, knots=KNOTS,
                             tile_b=2048, matmul_dtype=jnp.float32):
    """x: (B, input_dim) f32, t: (B,) f32 in [0, 1].
    params: list of (W, b) with W: (I, O, K), b: (O, K) exactly like the
    PyTorch Dynamic_FC parameters.  Returns (B, output_dim)."""
    B, in_dim = x.shape
    num_layers = len(params)
    out_dim = params[-1][0].shape[1]

    tile_b, nb, chunk = _choose_tiles(B, tile_b)
    Bp = nb * tile_b

    # Ones-augmented, sublane-padded x^T; batch padding is fused into this build.
    Ip0 = _round_up(in_dim + 1, 8)
    x_aug = jnp.zeros((Ip0, Bp), jnp.float32)
    x_aug = x_aug.at[:in_dim, :B].set(x.T.astype(jnp.float32))
    x_aug = x_aug.at[in_dim, :].set(1.0)
    t_row = jnp.zeros((1, Bp), jnp.float32).at[:, :B].set(
        t.reshape(1, B).astype(jnp.float32))

    stacked = _stack_params(params, matmul_dtype)

    in_specs = [pl.BlockSpec((Ip0, tile_b), lambda i: (0, i)),     # x^T tile
                pl.BlockSpec((1, tile_b), lambda i: (0, i))]       # t tile
    flops = 0
    for ws in stacked:
        in_specs.append(pl.BlockSpec(ws.shape, lambda i: (0, 0)))  # VMEM-resident
        flops += 2 * Bp * ws.shape[0] * ws.shape[1]
    param_bytes = sum(int(w.size) * w.dtype.itemsize for w in stacked)

    cost = pl.CostEstimate(
        flops=flops, transcendentals=0,
        bytes_accessed=4 * (x_aug.size + t_row.size + out_dim * Bp) + param_bytes)

    out = pl.pallas_call(
        _make_kernel(num_layers, degree, tuple(knots), tile_b, chunk),
        out_shape=jax.ShapeDtypeStruct((out_dim, Bp), jnp.float32),
        grid_spec=pltpu.PrefetchScalarGridSpec(
            num_scalar_prefetch=0,
            grid=(nb,),
            in_specs=in_specs,
            out_specs=pl.BlockSpec((out_dim, tile_b), lambda i: (0, i))),
        compiler_params=pltpu.CompilerParams(
            dimension_semantics=("parallel",)),   # megacore split on v7x
        cost_estimate=cost,
    )(x_aug, t_row, *stacked)

    return out[:, :B].T                                            # (B, output_dim)


def init_params(key, input_dim, hidden_dims, output_dim, degree=DEGREE, knots=KNOTS):
    """PyTorch-shaped params: W (I, O, K), b (O, K). Scaled for f32 sanity."""
    K = degree + 1 + len(knots)
    dims = [input_dim] + list(hidden_dims) + [output_dim]
    params = []
    for i in range(len(dims) - 1):
        key, kw, kb = jax.random.split(key, 3)
        scale = 1.0 / float(dims[i] * K) ** 0.5
        W = jax.random.normal(kw, (dims[i], dims[i + 1], K), jnp.float32) * scale
        b = jax.random.normal(kb, (dims[i + 1], K), jnp.float32) * 0.1
        params.append((W, b))
    return params


def _trunc_power_basis(t, degree=DEGREE, knots=KNOTS):
    cols = [jnp.ones_like(t)]
    for d in range(1, degree + 1):
        cols.append(t ** d)
    for kn in knots:
        r = jnp.maximum(t - kn, 0.0)
        cols.append(r if degree == 1 else r ** degree)
    return jnp.stack(cols, axis=1)                                 # (B, K)


def _reference(x, t, params, degree=DEGREE, knots=KNOTS):
    # Pure-JAX mirror of DynamicPredNet.forward (same math as the PyTorch module).
    tb = _trunc_power_basis(t, degree, knots)                      # (B, K)
    h = x
    for li, (W, b) in enumerate(params):
        wx = jnp.einsum('bi,iok->bok', h, W, precision=lax.Precision.HIGHEST)
        z = jnp.sum(wx * tb[:, None, :], axis=2)
        z = z + tb @ b.T
        if li < len(params) - 1:
            z = jnp.maximum(z, 0.0)
        h = z
    return h                                                       # (B, output_dim)


if __name__ == "__main__":
    B, input_dim, hidden_dims, output_dim = 8, 4, [32, 32], 1

    key = jax.random.PRNGKey(0)
    kx, kt, kp, kx2, kt2 = jax.random.split(key, 5)
    x = jax.random.normal(kx, (B, input_dim), jnp.float32)
    t = jax.random.uniform(kt, (B,), jnp.float32)                  # t in [0, 1)
    params = init_params(kp, input_dim, hidden_dims, output_dim)

    y = dynamic_pred_net_forward(x, t, params)
    jax.block_until_ready(y)
    ref = _reference(x, t, params)
    assert y.shape == (B, output_dim)
    assert jnp.allclose(y, ref, atol=1e-4, rtol=1e-4)

    # Multi-tile, non-multiple batch exercises the grid, padding and the
    # even-tile (v7x-balanced) path.
    B2 = 1300
    x2 = jax.random.normal(kx2, (B2, input_dim), jnp.float32)
    t2 = jax.random.uniform(kt2, (B2,), jnp.float32)
    y2 = dynamic_pred_net_forward(x2, t2, params)
    jax.block_until_ready(y2)
    ref2 = _reference(x2, t2, params)
    assert y2.shape == (B2, output_dim)
    assert jnp.allclose(y2, ref2, atol=1e-4, rtol=1e-4)

    print("KERNEL_OK")
</pallas_src>

<mosaic_0001>
module attributes {stable_mosaic.version = 11 : i64} {
  func.func @kernel(%arg0: i32, %arg1: memref<8x128xf32, #tpu.memory_space<vmem>>, %arg2: memref<1x128xf32, #tpu.memory_space<vmem>>, %arg3: memref<40x40xf32, #tpu.memory_space<vmem>>, %arg4: memref<40x200xf32, #tpu.memory_space<vmem>>, %arg5: memref<1x200xf32, #tpu.memory_space<vmem>>, %arg6: memref<1x128xf32, #tpu.memory_space<vmem>>) attributes {dimension_semantics = [#tpu.dimension_semantics<parallel>], iteration_bounds = array<i64: 1>, scalar_prefetch = 0 : i64, scratch_operands = 0 : i64, tpu.core_type = #tpu.core_type<tc>, window_params = [{transform_indices = @transform_0, window_bounds = array<i64: 8, 128>}, {transform_indices = @transform_1, window_bounds = array<i64: 1, 128>}, {pipeline_mode = #tpu.pipeline_mode<synchronous>, transform_indices = @transform_2, window_bounds = array<i64: 40, 40>}, {pipeline_mode = #tpu.pipeline_mode<synchronous>, transform_indices = @transform_3, window_bounds = array<i64: 40, 200>}, {pipeline_mode = #tpu.pipeline_mode<synchronous>, transform_indices = @transform_4, window_bounds = array<i64: 1, 200>}, {transform_indices = @transform_5, window_bounds = array<i64: 1, 128>}]} {
    %c0 = arith.constant 0 : index
    %c0_0 = arith.constant 0 : index
    %0 = vector.load %arg3[%c0, %c0_0] : memref<40x40xf32, #tpu.memory_space<vmem>>, vector<40x40xf32>
    %c0_1 = arith.constant 0 : index
    %c0_2 = arith.constant 0 : index
    %1 = vector.load %arg4[%c0_1, %c0_2] : memref<40x200xf32, #tpu.memory_space<vmem>>, vector<40x200xf32>
    %c0_3 = arith.constant 0 : index
    %c0_4 = arith.constant 0 : index
    %2 = vector.load %arg5[%c0_3, %c0_4] : memref<1x200xf32, #tpu.memory_space<vmem>>, vector<1x200xf32>
    %c0_i32 = arith.constant 0 : i32
    %c128_i32 = arith.constant 128 : i32
    %3 = arith.muli %c0_i32, %c128_i32 : i32
    %4 = tpu.assume_multiple %3, 128 : i32
    %c0_5 = arith.constant 0 : index
    %5 = arith.index_cast %4 : i32 to index
    %6 = vector.load %arg2[%c0_5, %5] : memref<1x128xf32, #tpu.memory_space<vmem>>, vector<1x128xf32>
    %7 = arith.mulf %6, %6 : vector<1x128xf32>
    %cst = arith.constant 0.333333343 : f32
    %8 = vector.broadcast %cst : f32 to vector<1x128xf32>
    %9 = arith.subf %6, %8 : vector<1x128xf32>
    %cst_6 = arith.constant 0.000000e+00 : f32
    %10 = vector.broadcast %cst_6 : f32 to vector<1x128xf32>
    %11 = arith.maximumf %9, %10 : vector<1x128xf32>
    %12 = arith.mulf %11, %11 : vector<1x128xf32>
    %cst_7 = arith.constant 0.666666686 : f32
    %13 = vector.broadcast %cst_7 : f32 to vector<1x128xf32>
    %14 = arith.subf %6, %13 : vector<1x128xf32>
    %cst_8 = arith.constant 0.000000e+00 : f32
    %15 = vector.broadcast %cst_8 : f32 to vector<1x128xf32>
    %16 = arith.maximumf %14, %15 : vector<1x128xf32>
    %17 = arith.mulf %16, %16 : vector<1x128xf32>
    %c0_9 = arith.constant 0 : index
    %18 = arith.index_cast %4 : i32 to index
    %19 = vector.load %arg1[%c0_9, %18] : memref<8x128xf32, #tpu.memory_space<vmem>>, vector<8x128xf32>
    %20 = vector.shape_cast %6 : vector<1x128xf32> to vector<1x128xf32>
    %21 = vector.broadcast %20 : vector<1x128xf32> to vector<8x128xf32>
    %22 = vector.shape_cast %7 : vector<1x128xf32> to vector<1x128xf32>
    %23 = vector.broadcast %22 : vector<1x128xf32> to vector<8x128xf32>
    %24 = vector.shape_cast %12 : vector<1x128xf32> to vector<1x128xf32>
    %25 = vector.broadcast %24 : vector<1x128xf32> to vector<8x128xf32>
    %26 = vector.shape_cast %17 : vector<1x128xf32> to vector<1x128xf32>
    %27 = vector.broadcast %26 : vector<1x128xf32> to vector<8x128xf32>
    %28 = arith.mulf %21, %19 : vector<8x128xf32>
    %29 = arith.mulf %23, %19 : vector<8x128xf32>
    %30 = arith.mulf %25, %19 : vector<8x128xf32>
    %31 = arith.mulf %27, %19 : vector<8x128xf32>
    %32 = tpu.concatenate %19, %28, %29, %30, %31 in 0 : vector<8x128xf32>, vector<8x128xf32>, vector<8x128xf32>, vector<8x128xf32>, vector<8x128xf32> -> vector<40x128xf32>
    %cst_10 = arith.constant dense<0.000000e+00> : vector<40x128xf32>
    %33 = tpu.matmul %0, %32, %cst_10 {dimension_numbers = #tpu.dot_dimension_numbers<[1], [0], [0], [1], [0, 0, 1, 1], [], []>} : vector<40x40xf32>, vector<40x128xf32>, vector<40x128xf32> -> vector<40x128xf32>
    %cst_11 = arith.constant 0.000000e+00 : f32
    %34 = vector.broadcast %cst_11 : f32 to vector<40x128xf32>
    %35 = arith.maximumf %33, %34 : vector<40x128xf32>
    %36 = vector.shape_cast %6 : vector<1x128xf32> to vector<1x128xf32>
    %37 = vector.broadcast %36 : vector<1x128xf32> to vector<40x128xf32>
    %38 = vector.shape_cast %7 : vector<1x128xf32> to vector<1x128xf32>
    %39 = vector.broadcast %38 : vector<1x128xf32> to vector<40x128xf32>
    %40 = vector.shape_cast %12 : vector<1x128xf32> to vector<1x128xf32>
    %41 = vector.broadcast %40 : vector<1x128xf32> to vector<40x128xf32>
    %42 = vector.shape_cast %17 : vector<1x128xf32> to vector<1x128xf32>
    %43 = vector.broadcast %42 : vector<1x128xf32> to vector<40x128xf32>
    %44 = arith.mulf %37, %35 : vector<40x128xf32>
    %45 = arith.mulf %39, %35 : vector<40x128xf32>
    %46 = arith.mulf %41, %35 : vector<40x128xf32>
    %47 = arith.mulf %43, %35 : vector<40x128xf32>
    %48 = tpu.concatenate %35, %44, %45, %46, %47 in 0 : vector<40x128xf32>, vector<40x128xf32>, vector<40x128xf32>, vector<40x128xf32>, vector<40x128xf32> -> vector<200x128xf32>
    %cst_12 = arith.constant dense<0.000000e+00> : vector<40x128xf32>
    %49 = tpu.matmul %1, %48, %cst_12 {dimension_numbers = #tpu.dot_dimension_numbers<[1], [0], [0], [1], [0, 0, 1, 1], [], []>} : vector<40x200xf32>, vector<200x128xf32>, vector<40x128xf32> -> vector<40x128xf32>
    %cst_13 = arith.constant 0.000000e+00 : f32
    %50 = vector.broadcast %cst_13 : f32 to vector<40x128xf32>
    %51 = arith.maximumf %49, %50 : vector<40x128xf32>
    %52 = arith.mulf %37, %51 : vector<40x128xf32>
    %53 = arith.mulf %39, %51 : vector<40x128xf32>
    %54 = arith.mulf %41, %51 : vector<40x128xf32>
    %55 = arith.mulf %43, %51 : vector<40x128xf32>
    %56 = tpu.concatenate %51, %52, %53, %54, %55 in 0 : vector<40x128xf32>, vector<40x128xf32>, vector<40x128xf32>, vector<40x128xf32>, vector<40x128xf32> -> vector<200x128xf32>
    %cst_14 = arith.constant dense<0.000000e+00> : vector<1x128xf32>
    %57 = tpu.matmul %2, %56, %cst_14 {dimension_numbers = #tpu.dot_dimension_numbers<[1], [0], [0], [1], [0, 0, 1, 1], [], []>} : vector<1x200xf32>, vector<200x128xf32>, vector<1x128xf32> -> vector<1x128xf32>
    %c0_15 = arith.constant 0 : index
    %58 = arith.index_cast %4 : i32 to index
    %59 = vector.load %arg6[%c0_15, %58] : memref<1x128xf32, #tpu.memory_space<vmem>>, vector<1x128xf32>
    tpu.vector_store %arg6[%c0_15, %58], %57 {strides = array<i32>} : memref<1x128xf32, #tpu.memory_space<vmem>>, vector<1x128xf32>,
    %c1_i32 = arith.constant 1 : i32
    return
  }
  func.func @transform_0(%arg0: i32) -> (i32, i32) {
    %c0_i32 = arith.constant 0 : i32
    %c0_i32_0 = arith.constant 0 : i32
    return %c0_i32, %arg0 : i32, i32
  }
  func.func @transform_1(%arg0: i32) -> (i32, i32) {
    %c0_i32 = arith.constant 0 : i32
    %c0_i32_0 = arith.constant 0 : i32
    return %c0_i32, %arg0 : i32, i32
  }
  func.func @transform_2(%arg0: i32) -> (i32, i32) {
    %c0_i32 = arith.constant 0 : i32
    %c0_i32_0 = arith.constant 0 : i32
    %c0_i32_1 = arith.constant 0 : i32
    return %c0_i32, %c0_i32_0 : i32, i32
  }
  func.func @transform_3(%arg0: i32) -> (i32, i32) {
    %c0_i32 = arith.constant 0 : i32
    %c0_i32_0 = arith.constant 0 : i32
    %c0_i32_1 = arith.constant 0 : i32
    return %c0_i32, %c0_i32_0 : i32, i32
  }
  func.func @transform_4(%arg0: i32) -> (i32, i32) {
    %c0_i32 = arith.constant 0 : i32
    %c0_i32_0 = arith.constant 0 : i32
    %c0_i32_1 = arith.constant 0 : i32
    return %c0_i32, %c0_i32_0 : i32, i32
  }
  func.func @transform_5(%arg0: i32) -> (i32, i32) {
    %c0_i32 = arith.constant 0 : i32
    %c0_i32_0 = arith.constant 0 : i32
    return %c0_i32, %arg0 : i32, i32
  }
}

</mosaic_0001>

<bundles_post_ra>
// kernel: tpu_custom_call.1
= control target key start
LH: loop header
LB: loop body
LE: loop exit
PB: predicated region body
PF: predicated region fallthrough
CT: control target
= control target key end

     0   :  { %10 = vsyncpa [#allocation3], 0  ;;  %s847_s0 = inlined_call_operand.hbm [shape: f32[8,128], index: 0, kind: input, shape index: {}]   ;;  %s848_s1 = inlined_call_operand.vmem [shape: f32[1,128], index: 1, kind: input, shape index: {}]   ;;  %s849_s2 = inlined_call_operand.hbm [shape: f32[40,40], index: 2, kind: input, shape index: {}]   ;;  %s850_s3 = inlined_call_operand.hbm [shape: f32[40,200], index: 3, kind: input, shape index: {}]   ;;  %s851_s4 = inlined_call_operand.vmem [shape: f32[1,200], index: 4, kind: input, shape index: {}]   ;;  %s852_s5 = inlined_call_operand.hbm [shape: f32[1,128], index: 5, kind: output, shape index: {}]  }
   0x1   :  { %11 = vsyncpa [#allocation6], 0 }
   0x2   :  { %12 = vsyncpa [#allocation4], 0  ;;  %s618_s18 = smov [#allocation5]  }
   0x3   :  { %s30_s19 = sshll.u32 %s618_s18, 4  ;;  %s31_s19 = int_to_ptr.vmem [resolvable:$true] %s30_s19 }
   0x4   :  { %s540_s20 = scalar_lea.vmem %s31_s19, 640  ;;  %p545_p1 = scmp.lt.s32.totalorder %s31_s19, %s31_s19 }
   0x5   :  { %p541_p0 = scmp.ne.s32.totalorder %s31_s19, %s540_s20  ;;  %p546_p2 = scmp.lt.s32.totalorder %s540_s20, %s540_s20 }
   0x7   :  { %p547_p3 = por %p546_p2, %p545_p1 }
   0x9   :  { %p548_p4 = pnand %p547_p3, %p541_p0 }
   0xb   :  { %551 = shalt.err (!%p548_p4)
}
   0xc   :  { %s619_s21 = smov 128   ;;  %s620_s22 = smov 8  }
   0xd   :  { %36 = dma.hbm_to_vmem [thread:$0]  %s849_s2, 640, %s31_s19, [#allocation6], %s619_s21, %s619_s21, %s620_s22  }
   0xe   :  { %s621_s25 = smov [#allocation2]   ;;  %s622_s27 = smov [#allocation7]  }
   0xf   :  { %s19_s26 = sshll.u32 %s621_s25, 4  ;;  %s42_s28 = sshll.u32 %s622_s27, 4  ;;  %s20_s26 = int_to_ptr.vmem [resolvable:$true] %s19_s26  ;;  %s43_s28 = int_to_ptr.vmem [resolvable:$true] %s42_s28 }
  0x10   :  { %s560_s29 = scalar_lea.vmem %s20_s26, 128  ;;  %p565_p6 = scmp.lt.s32.totalorder %s20_s26, %s20_s26 }
  0x11   :  { %p561_p5 = scmp.ne.s32.totalorder %s20_s26, %s560_s29  ;;  %p566_p7 = scmp.lt.s32.totalorder %s560_s29, %s560_s29 }
  0x13   :  { %p567_p8 = por %p566_p7, %p565_p6 }
  0x15   :  { %p568_p9 = pnand %p567_p8, %p561_p5 }
  0x17   :  { %571 = shalt.err (!%p568_p9)
}
  0x18   :  { %22 = dma.hbm_to_vmem [thread:$0]  %s847_s0, 128, %s20_s26, [#allocation3]  }
  0x19   :  { %s580_s7 = scalar_lea.vmem %s43_s28, 1280  ;;  %p585_p11 = scmp.lt.s32.totalorder %s43_s28, %s43_s28 }
  0x1a   :  { %p581_p10 = scmp.ne.s32.totalorder %s43_s28, %s580_s7  ;;  %p586_p12 = scmp.lt.s32.totalorder %s580_s7, %s580_s7 }
  0x1c   :  { %p587_p13 = por %p586_p12, %p585_p11 }
  0x1e   :  { %p588_p0 = pnand %p587_p13, %p581_p10 }
  0x20   :  { %591 = shalt.err (!%p588_p0)
}
  0x21   :  { %s623_s2 = smov 256   ;;  %s624_s8 = smov 16  }
  0x22   :  { %48 = dma.hbm_to_vmem [thread:$0]  %s850_s3, 1280, %s43_s28, [#allocation6], %s623_s2, %s623_s2, %s624_s8  }
  0x23   :  { %612 = dma.done.wait [#allocation3], 128  }
  0x24   :  { %613 = vsyncadd [#allocation3], 4294967168 }
  0x25   :  { %614 = dma.done.wait [#allocation6], 1920  }
  0x26   :  { %615 = vsyncadd [#allocation6], 4294965376  ;;  %v625_v0 = vmov 0.0   ;;  %vm626_vm0 = vmmov 0   ;;  %v86_v1 = vlaneseq  ;;  %v76_v3 = vld [vmem:[%s848_s1] sm:$0x1] }
  0x27   :  { %497 = vmatprep.subr.mxu0 %v625_v0  ;;  %507 = vmatprep.mubr.msk.f32.mxu0 %vm626_vm0, %v625_v0  ;;  %v475_v4 = vadd.f32 -0.6666667, %v76_v3  ;;  %v474_v5 = vadd.f32 -0.33333334, %v76_v3  ;;  %v77_v9 = vmul.f32 %v76_v3, %v76_v3  ;;  %v84_v12 = vld [vmem:[#allocation2] sm:$0xff]  ;;  %v60_v21 = vld [vmem:[#allocation5] sm:$0xff] }
  0x28   :  { %260 = vmatprep.subr.mxu1 %v625_v0  ;;  %v671_v2 = vshrl.u32 %v86_v1, 7  ;;  %vm113_vm1 = vcmask 326656   ;;  %v61_v22 = vld [vmem:[#allocation5 + $0x8] sm:$0xff]  ;;  %v62_v23 = vld [vmem:[#allocation5 + $0x10] sm:$0xff]  ;;  %v63_v24 = vld [vmem:[#allocation5 + $0x18] sm:$0xff]  ;;  %vm244_vm2 = vcmask 588800  }
  0x29   :  { %v82_v6 = vmax.f32 %v475_v4, 0.0  ;;  %v79_v8 = vmax.f32 %v474_v5, 0.0  ;;  %v64_v25 = vld [vmem:[#allocation5 + $0x20] sm:$0xff]  ;;  %v66_v26 = vld [vmem:[#allocation7 + $0x8] sm:$0xff]  ;;  %v65_v62 = vld [vmem:[#allocation7] sm:$0xff] }
  0x2a   :  { %v677_v7 = vsub.s32 0, %v671_v2  ;;  %481 = vmatprep.mubr.msk.f32.mxu1 %vm244_vm2, %v66_v26  ;;  %v68_v63 = vld [vmem:[#allocation7 + $0x18] sm:$0xff]  ;;  %v67_v1 = vld [vmem:[#allocation7 + $0x10] sm:$0xff]  ;;  %v69_v4 = vld [vmem:[#allocation7 + $0x20] sm:$0xff] }
  0x2b   :  { %v83_v10 = vmul.f32 %v82_v6, %v82_v6  ;;  %v80_v11 = vmul.f32 %v79_v8, %v79_v8  ;;  %v72_v5 = vld [vmem:[#allocation7 + $0x38] sm:$0xff]  ;;  %v71_v6 = vld [vmem:[#allocation7 + $0x30] sm:$0xff]  ;;  %v74_v8 = vld [vmem:[#allocation7 + $0x48] sm:$0xff] }
  0x2c   :  { %v686_v15 = vrot.slane %v77_v9, %v677_v7  ;;  %v691_v18 = vrot.slane %v76_v3, %v677_v7  ;;  %v70_v3 = vld [vmem:[#allocation7 + $0x28] sm:$0xff]  ;;  %v73_v9 = vld [vmem:[#allocation7 + $0x40] sm:$0xff] }
  0x2d   :  { %v680_v13 = vrot.slane %v83_v10, %v677_v7  ;;  %v683_v14 = vrot.slane %v80_v11, %v677_v7  ;;  %v382_v10 = vsub.s32 1, %v671_v2  ;;  %v780_v11 = vld [vmem:[%s851_s4] sm:$0x3]  ;;  %s627_s4 = smov [#allocation8]  }
  0x2e   :  { %v110_v19 = vmul.f32 %v686_v15, %v84_v12  ;;  %v109_v20 = vmul.f32 %v691_v18, %v84_v12  ;;  %s464_s12 = sshll.u32 %s627_s4, 4  ;;  %s465_s12 = int_to_ptr.vmem [resolvable:$true] %s464_s12 }
  0x2f   :  { %v112_v16 = vmul.f32 %v680_v13, %v84_v12  ;;  %v111_v17 = vmul.f32 %v683_v14, %v84_v12  ;;  %s592_s13 = scalar_lea.vmem %s465_s12, 16  ;;  %s596_s14 = scalar_lea.vmem %s465_s12, 32 }
  0x30   :  { %p593_p1 = scmp.ne.s32.totalorder %s465_s12, %s592_s13  ;;  %p597_p2 = scmp.lt.s32.totalorder %s465_s12, %s465_s12 }
  0x31   :  { %498 = vmatpush3.msra.mxu0 %v112_v16  ;;  %p598_p3 = scmp.lt.s32.totalorder %s596_s14, %s592_s13 }
  0x32   :  { %499 = vmatprep.subr.mxu0 %v625_v0 }
  0x33   :  { %500 = vmatpush3.msra.mxu0 %v111_v17  ;;  %p599_p4 = por %p598_p3, %p597_p2 }
  0x34   :  { %501 = vmatprep.subr.mxu0 %v625_v0 }
  0x35   :  { %502 = vmatpush3.msra.mxu0 %v110_v19  ;;  %p600_p5 = pnand %p599_p4, %p593_p1 }
  0x36   :  { %503 = vmatprep.subr.mxu0 %v625_v0 }
  0x37   :  { %504 = vmatpush3.msra.mxu0 %v109_v20 }
  0x38   :  { %505 = vmatprep.subr.mxu0 %v625_v0 }
  0x39   :  { %506 = vmatpush3.msra.mxu0 %v84_v12  ;;  %v383_v12 = vrot.slane %v780_v11, %v382_v10 }
  0x3a   :  { %508 = vmatmul.mubr.msk.f32.vlgmr.msra.gmra.mxu0 %vm113_vm1, %v60_v21  ;;  %387 = vmatprep.subr.mxu0 %v625_v0 }
  0x3b   :  { %510 = vmatprep.mubr.msk.f32.mxu0 %vm626_vm0, %v625_v0 }
  0x3e   :  { %511 = vmatmul.mubr.msk.f32.gmra.mxu0 %vm113_vm1, %v61_v22 }
  0x3f   :  { %513 = vmatprep.mubr.msk.f32.mxu0 %vm626_vm0, %v625_v0 }
  0x42   :  { %514 = vmatmul.mubr.msk.f32.gmra.mxu0 %vm113_vm1, %v62_v23 }
  0x43   :  { %516 = vmatprep.mubr.msk.f32.mxu0 %vm626_vm0, %v625_v0 }
  0x46   :  { %517 = vmatmul.mubr.msk.f32.gmra.mxu0 %vm113_vm1, %v63_v24 }
  0x47   :  { %519 = vmatprep.mubr.msk.f32.mxu0 %vm626_vm0, %v625_v0 }
  0x4a   :  { %520 = vmatmul.mubr.msk.f32.gmra.mxu0 %vm113_vm1, %v64_v25 }
  0x4b   :  { %486 = vmatprep.mubr.msk.f32.mxu0 %vm244_vm2, %v383_v12 }
  0xfa   :  { %v195_v27 = vpop.f32.mrf.mxu0 }
  0xfb   :  { %v714_v28 = vmax.f32 %v195_v27, 0.0 }
  0xfc   :  { %v509_v29 = vpop.f32.mrf.mxu0 }
  0xfd   :  { %v234_v30 = vmul.f32 %v714_v28, %v683_v14  ;;  %v229_v47 = vmul.f32 %v714_v28, %v686_v15  ;;  %v224_v52 = vmul.f32 %v714_v28, %v691_v18  ;;  %v239_v57 = vmul.f32 %v714_v28, %v680_v13 }
  0xfe   :  { %v200_v31 = vpop.f32.mrf.mxu0 }
  0xff   :  { %261 = vmatpush1.msra.mxu1 %v234_v30  ;;  %v720_v43 = vmax.f32 %v200_v31, 0.0 }
 0x100   :  { %v512_v32 = vpop.f32.mrf.mxu0  ;;  %262 = vmatprep.subr.mxu1 %v625_v0 }
 0x101   :  { %v230_v46 = vmul.f32 %v720_v43, %v686_v15  ;;  %v225_v51 = vmul.f32 %v720_v43, %v691_v18  ;;  %v240_v56 = vmul.f32 %v720_v43, %v680_v13  ;;  %v235_v61 = vmul.f32 %v720_v43, %v683_v14 }
 0x102   :  { %v205_v33 = vpop.f32.mrf.mxu0 }
 0x103   :  { %v221_v41 = vmax.f32 %v205_v33, 0.0 }
 0x104   :  { %v515_v34 = vpop.f32.mrf.mxu0 }
 0x105   :  { %v231_v45 = vmul.f32 %v221_v41, %v686_v15  ;;  %v226_v50 = vmul.f32 %v221_v41, %v691_v18  ;;  %v241_v55 = vmul.f32 %v221_v41, %v680_v13  ;;  %v236_v60 = vmul.f32 %v221_v41, %v683_v14 }
 0x106   :  { %v210_v35 = vpop.f32.mrf.mxu0 }
 0x107   :  { %v222_v38 = vmax.f32 %v210_v35, 0.0 }
 0x108   :  { %v518_v36 = vpop.f32.mrf.mxu0 }
 0x109   :  { %v232_v44 = vmul.f32 %v222_v38, %v686_v15  ;;  %v227_v49 = vmul.f32 %v222_v38, %v691_v18  ;;  %v242_v54 = vmul.f32 %v222_v38, %v680_v13  ;;  %v237_v59 = vmul.f32 %v222_v38, %v683_v14 }
 0x10a   :  { %v215_v37 = vpop.f32.mrf.mxu0 }
 0x10b   :  { %v223_v39 = vmax.f32 %v215_v37, 0.0 }
 0x10c   :  { %v521_v40 = vpop.f32.mrf.mxu0 }
 0x10d   :  { %v233_v42 = vmul.f32 %v223_v39, %v686_v15  ;;  %v228_v48 = vmul.f32 %v223_v39, %v691_v18  ;;  %v243_v53 = vmul.f32 %v223_v39, %v680_v13  ;;  %v238_v58 = vmul.f32 %v223_v39, %v683_v14 }
 0x10f   :  { %263 = vmatpush1.msra.mxu1 %v233_v42 }
 0x110   :  { %264 = vmatprep.subr.mxu1 %v625_v0 }
 0x111   :  { %265 = vmatpush1.msra.mxu1 %v232_v44 }
 0x112   :  { %266 = vmatprep.subr.mxu1 %v625_v0 }
 0x113   :  { %267 = vmatpush1.msra.mxu1 %v231_v45 }
 0x114   :  { %268 = vmatprep.subr.mxu1 %v625_v0 }
 0x115   :  { %269 = vmatpush1.msra.mxu1 %v230_v46 }
 0x116   :  { %270 = vmatprep.subr.mxu1 %v625_v0 }
 0x117   :  { %271 = vmatpush1.msra.mxu1 %v229_v47 }
 0x118   :  { %272 = vmatprep.subr.mxu1 %v625_v0 }
 0x119   :  { %273 = vmatpush1.msra.mxu1 %v228_v48 }
 0x11a   :  { %274 = vmatprep.subr.mxu1 %v625_v0 }
 0x11b   :  { %275 = vmatpush1.msra.mxu1 %v227_v49 }
 0x11c   :  { %276 = vmatprep.subr.mxu1 %v625_v0 }
 0x11d   :  { %277 = vmatpush1.msra.mxu1 %v226_v50 }
 0x11e   :  { %278 = vmatprep.subr.mxu1 %v625_v0 }
 0x11f   :  { %279 = vmatpush1.msra.mxu1 %v225_v51 }
 0x120   :  { %280 = vmatprep.subr.mxu1 %v625_v0 }
 0x121   :  { %281 = vmatpush1.msra.mxu1 %v224_v52 }
 0x122   :  { %282 = vmatprep.subr.mxu1 %v625_v0 }
 0x123   :  { %283 = vmatpush1.msra.mxu1 %v223_v39 }
 0x124   :  { %284 = vmatprep.subr.mxu1 %v625_v0 }
 0x125   :  { %285 = vmatpush1.msra.mxu1 %v222_v38 }
 0x126   :  { %286 = vmatprep.subr.mxu1 %v625_v0 }
 0x127   :  { %287 = vmatpush1.msra.mxu1 %v221_v41 }
 0x128   :  { %288 = vmatprep.subr.mxu1 %v625_v0 }
 0x129   :  { %289 = vmatpush1.msra.mxu1 %v720_v43 }
 0x12a   :  { %290 = vmatprep.subr.mxu1 %v625_v0 }
 0x12b   :  { %291 = vmatpush1.msra.mxu1 %v714_v28 }
 0x12c   :  { %306 = vmatprep.subr.mxu1 %v625_v0 }
 0x12d   :  { %307 = vmatpush2.msra.mxu1 %v243_v53 }
 0x12e   :  { %308 = vmatprep.subr.mxu1 %v625_v0 }
 0x12f   :  { %309 = vmatpush2.msra.mxu1 %v242_v54 }
 0x130   :  { %310 = vmatprep.subr.mxu1 %v625_v0 }
 0x131   :  { %311 = vmatpush2.msra.mxu1 %v241_v55 }
 0x132   :  { %312 = vmatprep.subr.mxu1 %v625_v0 }
 0x133   :  { %313 = vmatpush2.msra.mxu1 %v240_v56 }
 0x134   :  { %314 = vmatprep.subr.mxu1 %v625_v0 }
 0x135   :  { %315 = vmatpush2.msra.mxu1 %v239_v57 }
 0x136   :  { %316 = vmatprep.subr.mxu1 %v625_v0 }
 0x137   :  { %317 = vmatpush2.msra.mxu1 %v238_v58 }
 0x138   :  { %318 = vmatprep.subr.mxu1 %v625_v0 }
 0x139   :  { %319 = vmatpush2.msra.mxu1 %v237_v59 }
 0x13a   :  { %320 = vmatprep.subr.mxu1 %v625_v0 }
 0x13b   :  { %321 = vmatpush2.msra.mxu1 %v236_v60 }
 0x13c   :  { %322 = vmatprep.subr.mxu1 %v625_v0 }
 0x13d   :  { %323 = vmatpush2.msra.mxu1 %v235_v61 }
 0x13e   :  { %325 = vmatmul.mubr.f32.vlgmr.msra.gmra.mxu1 %v65_v62 }
 0x13f   :  { %482 = vmatprep.mubr.msk.f32.mxu1 %vm244_vm2, %v68_v63 }
 0x142   :  { %330 = vmatmul.mubr.f32.gmra.mxu1 %v67_v1 }
 0x143   :  { %483 = vmatprep.mubr.msk.f32.mxu1 %vm244_vm2, %v70_v3 }
 0x146   :  { %335 = vmatmul.mubr.f32.gmra.mxu1 %v69_v4 }
 0x147   :  { %484 = vmatprep.mubr.msk.f32.mxu1 %vm244_vm2, %v72_v5 }
 0x14a   :  { %340 = vmatmul.mubr.f32.gmra.mxu1 %v71_v6 }
 0x14b   :  { %485 = vmatprep.mubr.msk.f32.mxu1 %vm244_vm2, %v74_v8 }
 0x14e   :  { %345 = vmatmul.mubr.f32.gmra.mxu1 %v73_v9 }
 0x1fe   :  { %v326_v16 = vpop.f32.mrf.mxu1 }
 0x1ff   :  { %v784_v17 = vmax.f32 %v326_v16, 0.0 }
 0x200   :  { %v328_v19 = vpop.f32.mrf.mxu1 }
 0x201   :  { %v365_v20 = vmul.f32 %v784_v17, %v683_v14  ;;  %v360_v36 = vmul.f32 %v784_v17, %v686_v15  ;;  %v355_v40 = vmul.f32 %v784_v17, %v691_v18  ;;  %v370_v44 = vmul.f32 %v784_v17, %v680_v13 }
 0x202   :  { %v331_v21 = vpop.f32.mrf.mxu1 }
 0x203   :  { %388 = vmatpush1.msra.mxu0 %v365_v20  ;;  %v790_v32 = vmax.f32 %v331_v21, 0.0 }
 0x204   :  { %v333_v22 = vpop.f32.mrf.mxu1  ;;  %389 = vmatprep.subr.mxu0 %v625_v0 }
 0x205   :  { %v361_v35 = vmul.f32 %v790_v32, %v686_v15  ;;  %v371_v43 = vmul.f32 %v790_v32, %v680_v13  ;;  %v366_v48 = vmul.f32 %v790_v32, %v683_v14 }
 0x206   :  { %v336_v2 = vpop.f32.mrf.mxu1 }
 0x207   :  { %v352_v30 = vmax.f32 %v336_v2, 0.0 }
 0x208   :  { %v338_v23 = vpop.f32.mrf.mxu1 }
 0x209   :  { %v362_v34 = vmul.f32 %v352_v30, %v686_v15  ;;  %v357_v39 = vmul.f32 %v352_v30, %v691_v18  ;;  %v372_v42 = vmul.f32 %v352_v30, %v680_v13  ;;  %v367_v47 = vmul.f32 %v352_v30, %v683_v14 }
 0x20a   :  { %v341_v24 = vpop.f32.mrf.mxu1 }
 0x20b   :  { %v353_v27 = vmax.f32 %v341_v24, 0.0 }
 0x20c   :  { %v343_v25 = vpop.f32.mrf.mxu1 }
 0x20d   :  { %v363_v33 = vmul.f32 %v353_v27, %v686_v15  ;;  %v358_v38 = vmul.f32 %v353_v27, %v691_v18  ;;  %v373_v41 = vmul.f32 %v353_v27, %v680_v13  ;;  %v368_v46 = vmul.f32 %v353_v27, %v683_v14 }
 0x20e   :  { %v346_v26 = vpop.f32.mrf.mxu1 }
 0x20f   :  { %v354_v28 = vmax.f32 %v346_v26, 0.0 }
 0x210   :  { %v348_v29 = vpop.f32.mrf.mxu1 }
 0x211   :  { %v364_v31 = vmul.f32 %v354_v28, %v686_v15  ;;  %v359_v37 = vmul.f32 %v354_v28, %v691_v18  ;;  %v356_v15 = vmul.f32 %v790_v32, %v691_v18  ;;  %v374_v18 = vmul.f32 %v354_v28, %v680_v13 }
 0x212   :  { %v369_v45 = vmul.f32 %v354_v28, %v683_v14  ;;  %v379_v13 = vrot.slane %v780_v11, %v677_v7 }
 0x213   :  { %390 = vmatpush1.msra.mxu0 %v364_v31 }
 0x214   :  { %391 = vmatprep.subr.mxu0 %v625_v0 }
 0x215   :  { %392 = vmatpush1.msra.mxu0 %v363_v33 }
 0x216   :  { %393 = vmatprep.subr.mxu0 %v625_v0 }
 0x217   :  { %394 = vmatpush1.msra.mxu0 %v362_v34 }
 0x218   :  { %395 = vmatprep.subr.mxu0 %v625_v0 }
 0x219   :  { %396 = vmatpush1.msra.mxu0 %v361_v35 }
 0x21a   :  { %397 = vmatprep.subr.mxu0 %v625_v0 }
 0x21b   :  { %398 = vmatpush1.msra.mxu0 %v360_v36 }
 0x21c   :  { %399 = vmatprep.subr.mxu0 %v625_v0 }
 0x21d   :  { %400 = vmatpush1.msra.mxu0 %v359_v37 }
 0x21e   :  { %401 = vmatprep.subr.mxu0 %v625_v0 }
 0x21f   :  { %402 = vmatpush1.msra.mxu0 %v358_v38 }
 0x220   :  { %403 = vmatprep.subr.mxu0 %v625_v0 }
 0x221   :  { %404 = vmatpush1.msra.mxu0 %v357_v39 }
 0x222   :  { %405 = vmatprep.subr.mxu0 %v625_v0 }
 0x223   :  { %406 = vmatpush1.msra.mxu0 %v356_v15 }
 0x224   :  { %407 = vmatprep.subr.mxu0 %v625_v0 }
 0x225   :  { %408 = vmatpush1.msra.mxu0 %v355_v40 }
 0x226   :  { %409 = vmatprep.subr.mxu0 %v625_v0 }
 0x227   :  { %410 = vmatpush1.msra.mxu0 %v354_v28 }
 0x228   :  { %411 = vmatprep.subr.mxu0 %v625_v0 }
 0x229   :  { %412 = vmatpush1.msra.mxu0 %v353_v27 }
 0x22a   :  { %413 = vmatprep.subr.mxu0 %v625_v0 }
 0x22b   :  { %414 = vmatpush1.msra.mxu0 %v352_v30 }
 0x22c   :  { %415 = vmatprep.subr.mxu0 %v625_v0 }
 0x22d   :  { %416 = vmatpush1.msra.mxu0 %v790_v32 }
 0x22e   :  { %417 = vmatprep.subr.mxu0 %v625_v0 }
 0x22f   :  { %418 = vmatpush1.msra.mxu0 %v784_v17 }
 0x230   :  { %433 = vmatprep.subr.mxu0 %v625_v0 }
 0x231   :  { %434 = vmatpush2.msra.mxu0 %v374_v18 }
 0x232   :  { %435 = vmatprep.subr.mxu0 %v625_v0 }
 0x233   :  { %436 = vmatpush2.msra.mxu0 %v373_v41 }
 0x234   :  { %437 = vmatprep.subr.mxu0 %v625_v0 }
 0x235   :  { %438 = vmatpush2.msra.mxu0 %v372_v42 }
 0x236   :  { %439 = vmatprep.subr.mxu0 %v625_v0 }
 0x237   :  { %440 = vmatpush2.msra.mxu0 %v371_v43 }
 0x238   :  { %441 = vmatprep.subr.mxu0 %v625_v0 }
 0x239   :  { %442 = vmatpush2.msra.mxu0 %v370_v44 }
 0x23a   :  { %443 = vmatprep.subr.mxu0 %v625_v0 }
 0x23b   :  { %444 = vmatpush2.msra.mxu0 %v369_v45 }
 0x23c   :  { %445 = vmatprep.subr.mxu0 %v625_v0 }
 0x23d   :  { %446 = vmatpush2.msra.mxu0 %v368_v46 }
 0x23e   :  { %447 = vmatprep.subr.mxu0 %v625_v0 }
 0x23f   :  { %448 = vmatpush2.msra.mxu0 %v367_v47 }
 0x240   :  { %449 = vmatprep.subr.mxu0 %v625_v0 }
 0x241   :  { %450 = vmatpush2.msra.mxu0 %v366_v48 }
 0x242   :  { %452 = vmatmul.mubr.f32.vlgmr.msra.gmra.mxu0 %v379_v13 }
 0x302   :  { %v453_v49 = vpop.f32.mrf.mxu0 }
 0x303   :  { %457 = vst [vmem:[#allocation8] sm:$0x1] %v453_v49 }
 0x304   :  { %v455_v50 = vpop.f32.mrf.mxu0 }
 0x305   :  { %603 = shalt.err (!%p600_p5)
}
 0x306   :  { %467 = dma.vmem_to_hbm [thread:$0]  %s465_s12, 16, %s852_s5, [#allocation4]  }
 0x307   :  { %616 = dma.done.wait [#allocation4], 16  }
 0x308   :  { %617 = vsyncadd [#allocation4], 4294967280 }
 0x309   :  { %471 = vsyncpa [#allocation3], 1 }
 0x30a   :  { %472 = vsyncpa [#allocation6], 1 }
 0x30b   :  { %473 = vsyncpa [#allocation4], 1 }

</bundles_post_ra>
